<compile_context>
chip_gen: v6e
topology: v6e:2x2x1
jax: 0.10.0
libtpu: 0.0.40
codegen_flags: <defaults>
</compile_context>

<pallas_src>
import jax
import jax.numpy as jnp
import numpy as np
from jax import lax
from jax.experimental import pallas as pl
from jax.experimental.pallas import tpu as pltpu


def _round_up(x, m):
    return ((x + m - 1) // m) * m


def _pad_to(x, shape):
    pads = [(0, s - d) for d, s in zip(x.shape, shape)]
    if all(p[1] == 0 for p in pads):
        return x
    return jnp.pad(x, pads)


def _global_attention_kernel(hq_ref, mem_ref, qo_ref, bias_ref, wct_ref,
                             attn_ref, align_ref):
    # One batch element x one T tile per grid step.  All matmuls: bf16 operands, f32 accumulate.
    h_t = hq_ref[0]                      # (Tt, Dp) bf16 -- linear_in-projected queries
    h_s = mem_ref[0]                     # (Sp, Dp) bf16 -- memory bank

    # Raw scores (Tt, Sp): contract the feature dims of both operands (no in-kernel transpose).
    scores = lax.dot_general(h_t, h_s, (((1,), (1,)), ((), ())),
                             preferred_element_type=jnp.float32)
    # Additive length mask: 0 valid / -1e30 masked (covers the Sp-S padding columns too).
    scores = scores + bias_ref[0]

    # Softmax with deferred normalization.
    m = jnp.max(scores, axis=-1, keepdims=True)
    e = jnp.exp(scores - m)
    denom = jnp.sum(e, axis=-1, keepdims=True)
    inv = pl.reciprocal(denom, approx=True)          # EUP reciprocal, ~2^-12 rel error

    # Context from the unnormalized weights, scaled afterwards by a (Tt, 1) factor.
    c = jnp.dot(e.astype(jnp.bfloat16), h_s,
                preferred_element_type=jnp.float32) * inv            # (Tt, Dp)

    # linear_out on concat([c, h_t]) == c @ W_c^T + h_t @ W_q^T; the q_out term was hoisted.
    attn_h = jnp.tanh(
        jnp.dot(c.astype(jnp.bfloat16), wct_ref[...],
                preferred_element_type=jnp.float32)
        + qo_ref[0].astype(jnp.float32))                             # (Tt, Dp)

    # Stores are lane-dense full-block writes directly in time-major layout.
    attn_ref[...] = attn_h.astype(attn_ref.dtype)
    align_ref[...] = (e * inv).astype(align_ref.dtype)


def global_attention(inp, memory_bank, memory_lengths, w_in, w_out):
    """
    Args:
      inp:            [batch, tgt_len, dim]  float32 query vectors h_t
      memory_bank:    [batch, src_len, dim]  float32 source vectors h_s
      memory_lengths: [batch]                int32 valid source lengths
      w_in:           [dim, dim]             linear_in weight  (y = x @ W^T, no bias)
      w_out:          [dim, 2*dim]           linear_out weight (y = x @ W^T, no bias)
    Returns:
      attn_h        [tgt_len, batch, dim]      float32
      align_vectors [tgt_len, batch, src_len]  float32
    """
    B, T, D = inp.shape
    _, S, _ = memory_bank.shape
    out_dtype = jnp.float32
    mxu_dtype = jnp.bfloat16

    # Lane/sublane friendly padded sizes.
    Dp = _round_up(D, 128)
    Sp = _round_up(S, 128)
    Tt = min(256, _round_up(T, 8))          # T tile (sublane aligned, grown toward 256)
    Tp = _round_up(T, Tt)
    n_t = Tp // Tt

    # ---- Hoisted, fused projection: ONE (B*T, D) @ (D, 2D) matmul for linear_in and the
    #      h_t-half of linear_out (inp read once, one MXU call, one pad each). ----
    w_c = w_out[:, :D]                                    # context half of linear_out
    w_q = w_out[:, D:]                                    # query   half of linear_out
    w_cat = jnp.concatenate([w_in, w_q], axis=0)          # (2D, D)
    proj = jnp.einsum('btd,ed->bte', inp, w_cat)          # (B, T, 2D) f32
    h_t_proj = proj[..., :D]
    q_out = proj[..., D:]

    # ---- Precomputed additive length mask (replaces per-step iota/compare/where). ----
    valid = (jnp.arange(Sp, dtype=jnp.int32)[None, :]
             < memory_lengths.astype(jnp.int32)[:, None])                   # (B, Sp)
    bias = jnp.where(valid, 0.0, -1e30).astype(jnp.float32)[:, None, :]     # (B, 1, Sp)

    # ---- bf16 MXU operands, zero-padded to (Tp, Sp, Dp) shapes. ----
    hq_p = _pad_to(h_t_proj.astype(mxu_dtype), (B, Tp, Dp))
    qo_p = _pad_to(q_out.astype(mxu_dtype), (B, Tp, Dp))
    mem_p = _pad_to(memory_bank.astype(mxu_dtype), (B, Sp, Dp))
    wct_p = _pad_to(w_c.T.astype(mxu_dtype), (Dp, Dp))    # pre-transposed: kernel does c @ W_c^T

    grid = (B, n_t)   # both independent -> "parallel"; >= 2 megacore steps whenever B > 1

    grid_spec = pltpu.PrefetchScalarGridSpec(
        num_scalar_prefetch=0,
        grid=grid,
        in_specs=[
            pl.BlockSpec((1, Tt, Dp), lambda b, t: (b, t, 0)),   # h_t_proj
            pl.BlockSpec((1, Sp, Dp), lambda b, t: (b, 0, 0)),   # memory bank (const over t)
            pl.BlockSpec((1, Tt, Dp), lambda b, t: (b, t, 0)),   # q_out
            pl.BlockSpec((1, 1, Sp), lambda b, t: (b, 0, 0)),    # additive length mask
            pl.BlockSpec((Dp, Dp), lambda b, t: (0, 0)),         # W_c^T (const)
        ],
        out_specs=[
            pl.BlockSpec((Tt, Dp), lambda b, t: (t, b)),         # attn_h -> flat (Tp, B*Dp)
            pl.BlockSpec((Tt, Sp), lambda b, t: (t, b)),         # align  -> flat (Tp, B*Sp)
        ],
    )

    # ---- VMEM budget: count the 2x double-buffer factor exactly once, add temporaries,
    #      derive the cap per generation and keep headroom below physical VMEM. ----
    bpe = 2  # bf16 bytes
    needed = (
        2 * (Tt * Dp * bpe)        # h_t_proj block (double-buffered)
        + 2 * (Sp * Dp * bpe)      # memory-bank block
        + 2 * (Tt * Dp * bpe)      # q_out block
        + 2 * (8 * Sp * 4)         # mask bias block (sublane-padded)
        + 2 * (Dp * Dp * bpe)      # W_c^T block
        + 2 * (Tt * Dp * 4)        # attn_h output block
        + 2 * (Tt * Sp * 4)        # align output block
        + 4 * (Tt * Sp * 4)        # in-kernel (Tt,Sp) f32 temporaries (scores/e/align)
        + 2 * (Tt * Dp * 4)        # in-kernel (Tt,Dp) f32 temporaries (c, pre-tanh)
        + (2 << 20)                # margin
    )
    try:
        vmem_cap = int(pltpu.get_tpu_info().vmem_capacity_bytes)
    except Exception:
        vmem_cap = 64 * 1024 * 1024
    vmem_limit = int(max(min(needed, vmem_cap - (8 << 20)), 16 * 1024 * 1024))

    flops = 2 * B * (2 * Tp * Sp * Dp + Tp * Dp * Dp)
    transcendentals = B * (Tp * Sp + Tp * Dp + Tp)
    bytes_accessed = (bpe * (2 * B * Tp * Dp + B * Sp * Dp + Dp * Dp)
                      + 4 * B * Sp
                      + 4 * (Tp * B * Dp + Tp * B * Sp))

    attn_flat, align_flat = pl.pallas_call(
        _global_attention_kernel,
        grid_spec=grid_spec,
        out_shape=(
            jax.ShapeDtypeStruct((Tp, B * Dp), out_dtype),
            jax.ShapeDtypeStruct((Tp, B * Sp), out_dtype),
        ),
        compiler_params=pltpu.CompilerParams(
            dimension_semantics=("parallel", "parallel"),
            vmem_limit_bytes=vmem_limit),
        cost_estimate=pl.CostEstimate(
            flops=flops, transcendentals=transcendentals,
            bytes_accessed=bytes_accessed),
    )(hq_p, mem_p, qo_p, bias, wct_p)

    # Free reshape to time-major [tgt_len, batch, ...]; only padding is stripped (no transpose).
    attn_h = attn_flat.reshape(Tp, B, Dp)[:T, :, :D]
    align_vectors = align_flat.reshape(Tp, B, Sp)[:T, :, :S]
    return attn_h, align_vectors


def _reference(inp, memory_bank, memory_lengths, w_in, w_out):
    B, T, D = inp.shape
    _, S, _ = memory_bank.shape
    h_t_proj = jnp.einsum("btd,ed->bte", inp, w_in)
    align = jnp.einsum("btd,bsd->bts", h_t_proj, memory_bank)
    mask = jnp.arange(S)[None, None, :] < memory_lengths[:, None, None]
    align = jnp.where(mask, align, -jnp.inf)
    align_v = jax.nn.softmax(align, axis=-1)
    c = jnp.einsum("bts,bsd->btd", align_v, memory_bank)
    concat = jnp.concatenate([c, inp], axis=-1)
    attn_h = jnp.tanh(jnp.einsum("btk,dk->btd", concat, w_out))
    return jnp.transpose(attn_h, (1, 0, 2)), jnp.transpose(align_v, (1, 0, 2))


if __name__ == "__main__":
    key = jax.random.PRNGKey(0)
    k1, k2, k3, k4 = jax.random.split(key, 4)

    batch, tgt_len, src_len, dim = 2, 8, 8, 32

    inp = jax.random.normal(k1, (batch, tgt_len, dim), dtype=jnp.float32)
    memory_bank = jax.random.normal(k2, (batch, src_len, dim), dtype=jnp.float32)
    memory_lengths = jnp.array([src_len, 5], dtype=jnp.int32)

    # nn.Linear weight layout: [out_features, in_features]; y = x @ W^T, no bias.
    w_in = jax.random.normal(k3, (dim, dim), dtype=jnp.float32) * (1.0 / np.sqrt(dim))
    w_out = jax.random.normal(k4, (dim, 2 * dim), dtype=jnp.float32) * (1.0 / np.sqrt(2 * dim))

    attn_h, align_v = global_attention(inp, memory_bank, memory_lengths, w_in, w_out)
    jax.block_until_ready((attn_h, align_v))

    ref_attn, ref_align = _reference(inp, memory_bank, memory_lengths, w_in, w_out)
    # bf16 MXU operands (per performance review) -> loosened tolerances vs. the f32 reference:
    # the score rounding passes through exp/softmax, so absolute errors of a few 1e-2 are expected.
    np.testing.assert_allclose(np.asarray(attn_h), np.asarray(ref_attn), rtol=8e-2, atol=8e-2)
    np.testing.assert_allclose(np.asarray(align_v), np.asarray(ref_align), rtol=8e-2, atol=8e-2)

    assert attn_h.shape == (tgt_len, batch, dim)
    assert align_v.shape == (tgt_len, batch, src_len)
    print("KERNEL_OK")
</pallas_src>

<mosaic_0001>
module attributes {stable_mosaic.version = 11 : i64} {
  func.func @_global_attention_kernel(%arg0: i32, %arg1: i32, %arg2: memref<1x8x128xbf16, #tpu.memory_space<vmem>>, %arg3: memref<1x128x128xbf16, #tpu.memory_space<vmem>>, %arg4: memref<1x8x128xbf16, #tpu.memory_space<vmem>>, %arg5: memref<1x1x128xf32, #tpu.memory_space<vmem>>, %arg6: memref<128x128xbf16, #tpu.memory_space<vmem>>, %arg7: memref<8x128xf32, #tpu.memory_space<vmem>>, %arg8: memref<8x128xf32, #tpu.memory_space<vmem>>) attributes {dimension_semantics = [#tpu.dimension_semantics<parallel>, #tpu.dimension_semantics<parallel>], iteration_bounds = array<i64: 2, 1>, scalar_prefetch = 0 : i64, scratch_operands = 0 : i64, tpu.core_type = #tpu.core_type<tc>, window_params = [{transform_indices = @transform_0, window_bounds = array<i64: 1, 8, 128>}, {transform_indices = @transform_1, window_bounds = array<i64: 1, 128, 128>}, {transform_indices = @transform_2, window_bounds = array<i64: 1, 8, 128>}, {transform_indices = @transform_3, window_bounds = array<i64: 1, 1, 128>}, {pipeline_mode = #tpu.pipeline_mode<synchronous>, transform_indices = @transform_4, window_bounds = array<i64: 128, 128>}, {transform_indices = @transform_5, window_bounds = array<i64: 8, 128>}, {transform_indices = @transform_6, window_bounds = array<i64: 8, 128>}]} {
    %c0 = arith.constant 0 : index
    %c0_0 = arith.constant 0 : index
    %c0_1 = arith.constant 0 : index
    %0 = vector.load %arg2[%c0, %c0_0, %c0_1] : memref<1x8x128xbf16, #tpu.memory_space<vmem>>, vector<1x8x128xbf16>
    %1 = vector.shape_cast %0 : vector<1x8x128xbf16> to vector<8x128xbf16>
    %c0_2 = arith.constant 0 : index
    %c0_3 = arith.constant 0 : index
    %c0_4 = arith.constant 0 : index
    %2 = vector.load %arg3[%c0_2, %c0_3, %c0_4] : memref<1x128x128xbf16, #tpu.memory_space<vmem>>, vector<1x128x128xbf16>
    %3 = vector.shape_cast %2 : vector<1x128x128xbf16> to vector<128x128xbf16>
    %cst = arith.constant dense<0.000000e+00> : vector<8x128xf32>
    %4 = tpu.matmul %1, %3, %cst {dimension_numbers = #tpu.dot_dimension_numbers<[1], [1], [0], [0], [0, 0, 1, 0], [], []>} : vector<8x128xbf16>, vector<128x128xbf16>, vector<8x128xf32> -> vector<8x128xf32>
    %c0_5 = arith.constant 0 : index
    %c0_6 = arith.constant 0 : index
    %c0_7 = arith.constant 0 : index
    %5 = vector.load %arg5[%c0_5, %c0_6, %c0_7] : memref<1x1x128xf32, #tpu.memory_space<vmem>>, vector<1x1x128xf32>
    %6 = vector.shape_cast %5 : vector<1x1x128xf32> to vector<1x128xf32>
    %7 = vector.broadcast %6 : vector<1x128xf32> to vector<8x128xf32>
    %8 = arith.addf %4, %7 : vector<8x128xf32>
    %cst_8 = arith.constant dense<0xFF800000> : vector<8xf32>
    %9 = vector.multi_reduction <maximumf>, %8, %cst_8 [1] : vector<8x128xf32> to vector<8xf32>
    %10 = vector.shape_cast %9 : vector<8xf32> to vector<8x1xf32>
    %11 = vector.broadcast %10 : vector<8x1xf32> to vector<8x128xf32>
    %12 = arith.subf %8, %11 : vector<8x128xf32>
    %13 = math.exp %12 : vector<8x128xf32>
    %cst_9 = arith.constant dense<0.000000e+00> : vector<8xf32>
    %14 = vector.multi_reduction <add>, %13, %cst_9 [1] : vector<8x128xf32> to vector<8xf32>
    %15 = vector.shape_cast %14 : vector<8xf32> to vector<8x1xf32>
    %16 = tpu.reciprocal %15 {approx = true} : vector<8x1xf32> -> vector<8x1xf32>
    %17 = arith.truncf %13 : vector<8x128xf32> to vector<8x128xbf16>
    %cst_10 = arith.constant dense<0.000000e+00> : vector<8x128xf32>
    %18 = tpu.matmul %17, %3, %cst_10 {dimension_numbers = #tpu.dot_dimension_numbers<[1], [0], [0], [1], [0, 0, 1, 1], [], []>} : vector<8x128xbf16>, vector<128x128xbf16>, vector<8x128xf32> -> vector<8x128xf32>
    %19 = vector.broadcast %16 : vector<8x1xf32> to vector<8x128xf32>
    %20 = arith.mulf %18, %19 : vector<8x128xf32>
    %21 = arith.truncf %20 : vector<8x128xf32> to vector<8x128xbf16>
    %c0_11 = arith.constant 0 : index
    %c0_12 = arith.constant 0 : index
    %22 = vector.load %arg6[%c0_11, %c0_12] : memref<128x128xbf16, #tpu.memory_space<vmem>>, vector<128x128xbf16>
    %cst_13 = arith.constant dense<0.000000e+00> : vector<8x128xf32>
    %23 = tpu.matmul %21, %22, %cst_13 {dimension_numbers = #tpu.dot_dimension_numbers<[1], [0], [0], [1], [0, 0, 1, 1], [], []>} : vector<8x128xbf16>, vector<128x128xbf16>, vector<8x128xf32> -> vector<8x128xf32>
    %c0_14 = arith.constant 0 : index
    %c0_15 = arith.constant 0 : index
    %c0_16 = arith.constant 0 : index
    %24 = vector.load %arg4[%c0_14, %c0_15, %c0_16] : memref<1x8x128xbf16, #tpu.memory_space<vmem>>, vector<1x8x128xbf16>
    %25 = vector.shape_cast %24 : vector<1x8x128xbf16> to vector<8x128xbf16>
    %26 = arith.extf %25 : vector<8x128xbf16> to vector<8x128xf32>
    %27 = arith.addf %23, %26 : vector<8x128xf32>
    %28 = math.tanh %27 : vector<8x128xf32>
    %c0_17 = arith.constant 0 : index
    %c0_18 = arith.constant 0 : index
    %29 = vector.load %arg7[%c0_17, %c0_18] : memref<8x128xf32, #tpu.memory_space<vmem>>, vector<8x128xf32>
    tpu.vector_store %arg7[%c0_17, %c0_18], %28 {strides = array<i32>} : memref<8x128xf32, #tpu.memory_space<vmem>>, vector<8x128xf32>,
    %30 = vector.broadcast %16 : vector<8x1xf32> to vector<8x128xf32>
    %31 = arith.mulf %13, %30 : vector<8x128xf32>
    %c0_19 = arith.constant 0 : index
    %c0_20 = arith.constant 0 : index
    %32 = vector.load %arg8[%c0_19, %c0_20] : memref<8x128xf32, #tpu.memory_space<vmem>>, vector<8x128xf32>
    tpu.vector_store %arg8[%c0_19, %c0_20], %31 {strides = array<i32>} : memref<8x128xf32, #tpu.memory_space<vmem>>, vector<8x128xf32>,
    return
  }
  func.func @transform_0(%arg0: i32, %arg1: i32) -> (i32, i32, i32) {
    %c0_i32 = arith.constant 0 : i32
    %c0_i32_0 = arith.constant 0 : i32
    return %arg0, %arg1, %c0_i32 : i32, i32, i32
  }
  func.func @transform_1(%arg0: i32, %arg1: i32) -> (i32, i32, i32) {
    %c0_i32 = arith.constant 0 : i32
    %c0_i32_0 = arith.constant 0 : i32
    %c0_i32_1 = arith.constant 0 : i32
    return %arg0, %c0_i32, %c0_i32_0 : i32, i32, i32
  }
  func.func @transform_2(%arg0: i32, %arg1: i32) -> (i32, i32, i32) {
    %c0_i32 = arith.constant 0 : i32
    %c0_i32_0 = arith.constant 0 : i32
    return %arg0, %arg1, %c0_i32 : i32, i32, i32
  }
  func.func @transform_3(%arg0: i32, %arg1: i32) -> (i32, i32, i32) {
    %c0_i32 = arith.constant 0 : i32
    %c0_i32_0 = arith.constant 0 : i32
    %c0_i32_1 = arith.constant 0 : i32
    return %arg0, %c0_i32, %c0_i32_0 : i32, i32, i32
  }
  func.func @transform_4(%arg0: i32, %arg1: i32) -> (i32, i32) {
    %c0_i32 = arith.constant 0 : i32
    %c0_i32_0 = arith.constant 0 : i32
    %c0_i32_1 = arith.constant 0 : i32
    return %c0_i32, %c0_i32_0 : i32, i32
  }
  func.func @transform_5(%arg0: i32, %arg1: i32) -> (i32, i32) {
    %c0_i32 = arith.constant 0 : i32
    return %arg1, %arg0 : i32, i32
  }
  func.func @transform_6(%arg0: i32, %arg1: i32) -> (i32, i32) {
    %c0_i32 = arith.constant 0 : i32
    return %arg1, %arg0 : i32, i32
  }
}

</mosaic_0001>

<bundles_post_ra>
// kernel: tpu_custom_call.1
= control target key start
LH: loop header
LB: loop body
LE: loop exit
PB: predicated region body
PF: predicated region fallthrough
CT: control target
= control target key end

     0   :  { %s1706_s0 = inlined_call_operand.hbm [shape: bf16[2,8,128], index: 0, kind: input, shape index: {}]   ;;  %s1707_s1 = inlined_call_operand.hbm [shape: bf16[2,128,128], index: 1, kind: input, shape index: {}]   ;;  %s1708_s2 = inlined_call_operand.hbm [shape: bf16[2,8,128], index: 2, kind: input, shape index: {}]   ;;  %s1709_s3 = inlined_call_operand.vmem [shape: f32[2,1,128], index: 3, kind: input, shape index: {}]   ;;  %s1710_s4 = inlined_call_operand.hbm [shape: bf16[128,128], index: 4, kind: input, shape index: {}]   ;;  %s1711_s5 = inlined_call_operand.hbm [shape: f32[8,256], index: 5, kind: output, shape index: {0}]   ;;  %s1712_s6 = inlined_call_operand.hbm [shape: f32[8,256], index: 6, kind: output, shape index: {1}]  }
   0x1   :  { %1721 = sst [smem:[#allocation21_spill]] %s1706_s0 }
   0x2   :  { %1722 = sst [smem:[#allocation22_spill]] %s1707_s1 }
   0x3   :  { %1723 = sst [smem:[#allocation23_spill]] %s1710_s4 }
   0x4   :  { %12 = vsyncpa [#allocation3], 0 }
   0x5   :  { %14 = vsyncpa [#allocation3 + $0x1], 0 }
   0x6   :  { %15 = vsyncpa [#allocation6], 0 }
   0x7   :  { %17 = vsyncpa [#allocation6 + $0x1], 0 }
   0x8   :  { %18 = vsyncpa [#allocation9], 0 }
   0x9   :  { %19 = vsyncpa [#allocation4], 0 }
   0xa   :  { %21 = vsyncpa [#allocation4 + $0x1], 0 }
   0xb   :  { %22 = vsyncpa [#allocation12], 0 }
   0xc   :  { %24 = vsyncpa [#allocation12 + $0x1], 0  ;;  %s1410_s21 = smov 0   ;;  %s1412_s22 = smov 0  }
   0xd   :  { %s1414_s23 = smov 0   ;;  %s1416_s24 = smov 0  }
   0xe   :  { %s1418_s25 = smov 0   ;;  %s1420_s26 = smov 0  }
   0xf LB: > { %1724 = sst [smem:[#allocation18_spill]] %s1351_s23  ;;  %s42_s27 = sadd.s32 1, %s1359_s25  ;;  %s1363_s26 = sphi %s1420_s26, %s30_s26   ;;  %s1359_s25 = sphi %s1418_s25, %s1751_s25   ;;  %s1355_s24 = sphi %s1416_s24, %s1750_s24   ;;  %s1351_s23 = sphi %s1414_s23, %s1746_s23   ;;  %s1347_s22 = sphi %s1412_s22, %s1749_s22   ;;  %s1343_s21 = sphi %s1410_s21, %s1748_s21  }
  0x10   : > { %s51_s28 = sadd.s32 1, %s1351_s23  ;;  %p44_p0 = scmp.ge.s32.totalorder %s42_s27, 2 }
  0x11   : > { %p58_p1 = scmp.ne.s32.totalorder %s1351_s23, %s1347_s22  ;;  %p59_p2 = scmp.eq.s32.totalorder %s1363_s26, 0 }
  0x12   : > { %s1753_s27 = smov (%p44_p0, %s42_s27), 0  ;;  %p1057_p6 = scmp.lt.s32.totalorder %s1363_s26, 2 }
  0x13   : > { %1725 = sst [smem:[#allocation19_spill]] %s1753_s27  ;;  %p60_p3 = por %p59_p2, %p58_p1 }
  0x14   : > { %s46_s29 = ssub.s32 %s1359_s25, %s1753_s27  ;;  %s1455_s30 = sand.u32 1, %s1351_s23  }
  0x15   : > { %p49_p5 = scmp.eq.s32.totalorder %s46_s29, 0  ;;  %s277_s7 = sand.u32 1, %s1363_s26  }
  0x16   : > { %p1461_p7 = pnand %p1057_p6, %p60_p3  ;;  %s898_s10 = sshll.u32 %s1455_s30, 6 }
  0x17   : > { %s1459_s8 = scalar_select %p49_p5, %s1351_s23, %s51_s28  }
  0x18   : > { %s933_s11 = sshll.u32 %s1359_s25, 10  ;;  %s1728_s1 = sld [smem:[#allocation22_spill]] }
  0x19   : > { %1726 = sst [smem:[#allocation20_spill]] %s1459_s8  ;;  %s281_s15 = scalar_lea.vmem [#allocation5], %s898_s10 }
  0x1a   : > { %s288_s16 = sshll.u32 %s281_s15, 4  ;;  %s1470_s17 = scalar_lea.sflag [#allocation6], %s277_s7  ;;  %s289_s16 = int_to_ptr.vmem [resolvable:$true] %s288_s16 }
  0x1b   : > { %p1717_p8 = pneg %p1461_p7  ;;  %s1148_s18 = scalar_lea.vmem %s289_s16, 1024 }
  0x1c   : > { %p1149_p9 = scmp.ne.s32.totalorder %s289_s16, %s1148_s18  ;;  %s1365_s19 = smov [#allocation5]  }
  0x1d   : > { %s1153_s20 = sshll.u32 %s1365_s19, 4  ;;  %s1154_s20 = int_to_ptr.vmem [resolvable:$false] %s1153_s20 }
  0x1e   : > { %s287_s14 = scalar_lea.hbm %s1728_s1, %s933_s11  ;;  %p1151_p10 = pnand %p1149_p9, %p1717_p8 }
  0x1f   : > { %s1155_s28 = scalar_lea.vmem %s1154_s20, 2048  ;;  %p1156_p12 = scmp.lt.s32.totalorder %s289_s16, %s1154_s20 }
  0x20   : > { %p1152_p11 = pneg %p1151_p10  ;;  %p1157_p13 = scmp.lt.s32.totalorder %s1155_s28, %s1148_s18 }
  0x22   : > { %p1158_p0 = por %p1157_p13, %p1156_p12 }
  0x24   : > { %p1159_p2 = pnand %p1158_p0, %p1152_p11 }
  0x26   : > { %1162 = shalt.err (!%p1159_p2)
}
  0x27   : > { %s1713_s29 = smov 64   ;;  %s1714_s7 = smov 4  }
  0x28   : > { %1045 = dma.hbm_to_vmem [thread:$0]  (!%p1461_p7), %s287_s14, 1024, %s289_s16, %s1470_s17, %s1713_s29, %s1713_s29, %s1714_s7  }
  0x29   : > { %s1484_s10 = sadd.s32 4294967295, %s1363_s26   ;;  %s892_s11 = sadd.s32 4294967294, %s1363_s26  }
  0x2a   : > { %p64_p3 = scmp.ne.s32.totalorder %s1347_s22, %s1343_s21  ;;  %p1716_p5 = scmp.eq.s32.totalorder %s1484_s10, 0 }
  0x2b   : > { %p191_p6 = scmp.eq.s32.totalorder %s1484_s10, 1  ;;  %p197_p9 = scmp.eq.s32.totalorder %s892_s11, 1 }
  0x2c   : > { %p893_p10 = scmp.ge.s32.totalorder %s1363_s26, 1  ;;  %p1494_p11 = por %p1716_p5, %p64_p3 }
  0x2d   : > { %p1501_p12 = por %p191_p6, %p58_p1  ;;  %p1505_p13 = por %p197_p9, %p64_p3 }
  0x2e   : > { %p232_p0 = scmp.lt.s32.totalorder %s1363_s26, 3  ;;  %s1368_s16 = smov [#allocation8]  }
  0x2f   : > { %s244_s18 = sshll.u32 %s1368_s16, 4  ;;  %s1719_s19 = sshll.u32 %s1455_s30, 2  ;;  %s245_s18 = int_to_ptr.vmem [resolvable:$true] %s244_s18 }
  0x30   : > { %p1510_p2 = pnand %p893_p10, %p232_p0  ;;  %s1718_s20 = sshll.u32 %s1359_s25, 6 }
  0x31   : > { %s1734_s0 = sld [smem:[#allocation21_spill]]  ;;  %s262_s1 = scalar_lea.vmem [#allocation2], %s1719_s19 }
  0x32   : > { %p1035_p4 = pneg %p1510_p2  ;;  %s270_s16 = sshll.u32 %s262_s1, 4  ;;  %s271_s16 = int_to_ptr.vmem [resolvable:$true] %s270_s16 }
  0x33   : > { %s1174_s27 = scalar_lea.vmem %s245_s18, 1024  ;;  %p1182_p10 = scmp.lt.s32.totalorder %s245_s18, %s245_s18 }
  0x34   : > { %p1520_p1 = pnand %p1035_p4, %p1716_p5  ;;  %p1175_p6 = scmp.ne.s32.totalorder %s245_s18, %s1174_s27 }
  0x35   : > { %p1183_p0 = scmp.lt.s32.totalorder %s1174_s27, %s1174_s27 }
  0x36   : > { %p1165_p3 = pneg %p1520_p1 }
  0x37   : > { %s1529_s7 = scalar_lea.hbm %s1734_s0, %s1718_s20  ;;  %p1184_p5 = por %p1183_p0, %p1182_p10 }
  0x38   : > { %p1177_p9 = pnand %p1175_p6, %p1165_p3 }
  0x3a   : > { %p1178_p4 = pneg %p1177_p9 }
  0x3c   : > { %p1185_p8 = pnand %p1184_p5, %p1178_p4 }
  0x3e   : > { %1188 = shalt.err (!%p1185_p8)
}
  0x3f   : > { %s1735_s29 = smov 4   ;;  %s1736_s11 = smov 64  }
  0x40   : > { %s1737_s4 = sld [smem:[#allocation23_spill]]  ;;  %s259_s1 = scalar_lea.sflag [#allocation3], %s1455_s30 }
  0x41   : > { %s1202_s0 = scalar_lea.vmem %s271_s16, 64  ;;  %p1738_p6 = pneg %p1461_p7 }
  0x42   : > { %p1203_p3 = scmp.ne.s32.totalorder %s271_s16, %s1202_s0  ;;  %s1369_s27 = smov [#allocation2]  }
  0x43   : > { %s1207_s8 = sshll.u32 %s1369_s27, 4  ;;  %s1208_s8 = int_to_ptr.vmem [resolvable:$false] %s1207_s8 }
  0x44   : > { %p1205_p9 = pnand %p1203_p3, %p1738_p6  ;;  %s1209_s28 = scalar_lea.vmem %s1208_s8, 128 }
  0x45   : > { %p1210_p8 = scmp.lt.s32.totalorder %s271_s16, %s1208_s8  ;;  %p1211_p5 = scmp.lt.s32.totalorder %s1209_s28, %s1202_s0 }
  0x46   : > { %1038 = dma.hbm_to_vmem [thread:$0]  (!%p1520_p1), %s1737_s4, 1024, %s245_s18, [#allocation9], %s1736_s11, %s1736_s11, %s1735_s29  }
  0x47   : > { %p1206_p10 = pneg %p1205_p9  ;;  %p1212_p4 = por %p1211_p5, %p1210_p8 }
  0x49   : > { %p1213_p0 = pnand %p1212_p4, %p1206_p10 }
  0x4b   : > { %1216 = shalt.err (!%p1213_p0)
}
  0x4c   : > { %1042 = dma.hbm_to_vmem [thread:$0]  (!%p1461_p7), %s1529_s7, 64, %s271_s16, %s259_s1  }
  0x4d   : > { %s1739_s18 = sshll.u32 %s1359_s25, 6  ;;  %s1740_s11 = sshll.u32 %s1455_s30, 2 }
  0x4e   : > { %s308_s29 = scalar_lea.hbm %s1708_s2, %s1739_s18  ;;  %s302_s27 = scalar_lea.vmem [#allocation7], %s1740_s11 }
  0x4f   : > { %s310_s4 = sshll.u32 %s302_s27, 4  ;;  %p1741_p3 = pmov %p1738_p6  ;;  %s311_s4 = int_to_ptr.vmem [resolvable:$true] %s310_s4 }
  0x50   : > { %s1230_s0 = scalar_lea.vmem %s311_s4, 64  ;;  %s1370_s8 = smov [#allocation7]  }
  0x51   : > { %p1231_p1 = scmp.ne.s32.totalorder %s311_s4, %s1230_s0  ;;  %s1235_s28 = sshll.u32 %s1370_s8, 4  ;;  %s1236_s28 = int_to_ptr.vmem [resolvable:$false] %s1235_s28 }
  0x52   : > { %s1237_s23 = scalar_lea.vmem %s1236_s28, 128  ;;  %p1238_p10 = scmp.lt.s32.totalorder %s311_s4, %s1236_s28 }
  0x53   : > { %p1233_p6 = pnand %p1231_p1, %p1741_p3  ;;  %p1239_p8 = scmp.lt.s32.totalorder %s1237_s23, %s1230_s0 }
  0x55   : > { %p1234_p9 = pneg %p1233_p6  ;;  %p1240_p5 = por %p1239_p8, %p1238_p10 }
  0x57   : > { %p1241_p4 = pnand %p1240_p5, %p1234_p9 }
  0x59   : > { %1244 = shalt.err (!%p1241_p4)
}
  0x5a   : > { %1048 = dma.hbm_to_vmem [thread:$0]  (!%p1461_p7), %s308_s29, 64, %s311_s4, %s1470_s17  }
  0x5b   : > { %325 = sbr.rel (%p1510_p2) target bundleno = 941 (0x3ad), region = 40  ;;  %s1566_s30 = sand.u32 (!%p1510_p2), 1, %s1347_s22  }
  0x5c   : > { %s904_s7 = sshll.u32 (!%p1510_p2), %s1566_s30, 2  ;;  %s328_s16 = scalar_lea.sflag (!%p1510_p2), [#allocation3], %s1566_s30 }
  0x5d   : > { %s1570_s1 = scalar_lea.vmem (!%p1510_p2), [#allocation2], %s904_s7 }
  0x60   : > { %1322 = dma.done.wait (%p1494_p11), %s328_s16, 64  }
  0x61   : > { %1324 = vsyncadd (%p1494_p11), %s328_s16, 4294967232  ;;  %s336_s4 = sand.u32 1, %s1484_s10   ;;  %s905_s23 = sshll.u32 %s1566_s30, 6 }
  0x62   : > { %s337_s9 = scalar_lea.sflag [#allocation6], %s336_s4  ;;  %s1578_s17 = scalar_lea.vmem [#allocation5], %s905_s23 }
  0x63   : > { %1326 = dma.done.wait (%p1494_p11), %s337_s9, 1088  }
  0x64   : > { %1328 = vsyncadd (%p1494_p11), %s337_s9, 4294966208  ;;  %s1584_s15 = scalar_lea.vmem [#allocation7], %s904_s7  ;;  %p1742_p7 = scmp.eq.s32.totalorder %s1484_s10, 0 }
  0x66   : > { %1330 = dma.done.wait (%p1742_p7), [#allocation9], 1024   ;;  %p1743_p2 = pmov %p1742_p7 }
  0x67   : > { %v1371_v0 = vmov 0.0   ;;  %vm1372_vm0 = vmmov 0   ;;  %v1113_v1 = vld [vmem:[%s1578_s17 + $0x38] sm:$0xff]   ;;  %v1114_v2 = vld [vmem:[%s1578_s17 + $0x30] sm:$0xff]   ;;  %v1115_v3 = vld [vmem:[%s1578_s17 + $0x28] sm:$0xff]   ;;  %p400_p11 = scmp.lt.s32.totalorder %s1355_s24, 1 }
  0x68   : > { %1332 = vsyncadd (%p1743_p2), [#allocation9], 4294966272  ;;  %961 = vmatprep.subr.bf16.mxu0 %v1371_v0  ;;  %977 = vmatprep.mubr.msk.bf16.mxu0 %vm1372_vm0, %v1371_v0  ;;  %v1116_v4 = vld [vmem:[%s1578_s17 + $0x20] sm:$0xff]   ;;  %v1117_v5 = vld [vmem:[%s1578_s17 + $0x18] sm:$0xff]   ;;  %s908_s20 = sshll.u32 %s1566_s30, 3  ;;  %s929_s11 = sshll.u32 %s1355_s24, 7 }
  0x69   : > { %981 = vmatprep.subr.bf16.mxu1 %v1371_v0  ;;  %997 = vmatprep.mubr.msk.bf16.mxu1 %vm1372_vm0, %v1371_v0  ;;  %v1118_v6 = vld [vmem:[%s1578_s17 + $0x10] sm:$0xff]   ;;  %v1119_v7 = vld [vmem:[%s1578_s17 + $0x8] sm:$0xff]   ;;  %v1120_v8 = vld [vmem:[%s1578_s17] sm:$0xff]   ;;  %s401_s10 = scalar_select %p400_p11, %s1355_s24, 1 }
  0x6a   : > { %962 = vmatpush3.bf16.xpose.msra.mxu0 %v1113_v1  ;;  %982 = vmatpush3.bf16.msra.mxu1 %v1113_v1  ;;  %v404_v9 = vld [vmem:[%s1570_s1] sm:$0xf]  ;;  %v1121_v21 = vld [vmem:[#allocation8 + $0x38] sm:$0xff]   ;;  %v1123_v23 = vld [vmem:[#allocation8 + $0x28] sm:$0xff]   ;;  %s399_s29 = scalar_lea.vmem [#allocation11], %s908_s20  ;;  %s711_s8 = scalar_lea.hbm %s1712_s6, %s929_s11 }
  0x6b   : > { %963 = vmatprep.subr.bf16.mxu0 %v1371_v0  ;;  %983 = vmatprep.subr.bf16.mxu1 %v1371_v0  ;;  %s402_s19 = scalar_lea.vmem %s1709_s3, %s401_s10  ;;  %v1122_v22 = vld [vmem:[#allocation8 + $0x30] sm:$0xff]   ;;  %v1124_v24 = vld [vmem:[#allocation8 + $0x20] sm:$0xff]   ;;  %v1125_v25 = vld [vmem:[#allocation8 + $0x18] sm:$0xff]   ;;  %s713_s28 = sshll.u32 %s399_s29, 4  ;;  %s714_s28 = int_to_ptr.vmem [resolvable:$true] %s713_s28 }
  0x6c   : > { %v910_v10 = vld [vmem:[%s402_s19] ss:$0 sm:$0xff]  ;;  %v1127_v27 = vld [vmem:[#allocation8 + $0x8] sm:$0xff]   ;;  %v1128_v28 = vld [vmem:[#allocation8] sm:$0xff]   ;;  %s683_s7 = scalar_lea.sflag [#allocation12], %s1566_s30  ;;  %s1245_s16 = scalar_lea.vmem %s714_s28, 128 }
  0x6d   : > { %v1126_v26 = vld [vmem:[#allocation8 + $0x10] sm:$0xff]   ;;  %p1246_p0 = scmp.ne.s32.totalorder %s714_s28, %s1245_s16  ;;  %s1373_s1 = smov [#allocation11]  }
  0x6e   : > { %984 = vmatpush3.bf16.msra.mxu1 %v1114_v2  ;;  %s1249_s4 = sshll.u32 %s1373_s1, 4  ;;  %s1250_s4 = int_to_ptr.vmem [resolvable:$false] %s1249_s4 }
  0x6f   : > { %985 = vmatprep.subr.bf16.mxu1 %v1371_v0  ;;  %p1247_p1 = pnand %p1246_p0, %p1501_p12  ;;  %s1251_s23 = scalar_lea.vmem %s1250_s4, 256 }
  0x70   : > { %p1252_p6 = scmp.lt.s32.totalorder %s714_s28, %s1250_s4  ;;  %p1253_p9 = scmp.lt.s32.totalorder %s1251_s23, %s1245_s16 }
  0x71   : > { %p1248_p3 = pneg %p1247_p1 }
  0x72   : > { %964 = vmatpush3.bf16.xpose.msra.mxu0 %v1114_v2  ;;  %986 = vmatpush3.bf16.msra.mxu1 %v1115_v3  ;;  %p1254_p10 = por %p1253_p9, %p1252_p6 }
  0x73   : > { %965 = vmatprep.subr.bf16.mxu0 %v1371_v0  ;;  %987 = vmatprep.subr.bf16.mxu1 %v1371_v0 }
  0x74   : > { %p1255_p8 = pnand %p1254_p10, %p1248_p3 }
  0x76   : > { %988 = vmatpush3.bf16.msra.mxu1 %v1116_v4 }
  0x77   : > { %989 = vmatprep.subr.bf16.mxu1 %v1371_v0 }
  0x7a   : > { %966 = vmatpush3.bf16.xpose.msra.mxu0 %v1115_v3  ;;  %990 = vmatpush3.bf16.msra.mxu1 %v1117_v5 }
  0x7b   : > { %967 = vmatprep.subr.bf16.mxu0 %v1371_v0  ;;  %991 = vmatprep.subr.bf16.mxu1 %v1371_v0 }
  0x7e   : > { %992 = vmatpush3.bf16.msra.mxu1 %v1118_v6 }
  0x7f   : > { %993 = vmatprep.subr.bf16.mxu1 %v1371_v0 }
  0x82   : > { %968 = vmatpush3.bf16.xpose.msra.mxu0 %v1116_v4  ;;  %994 = vmatpush3.bf16.msra.mxu1 %v1119_v7 }
  0x83   : > { %969 = vmatprep.subr.bf16.mxu0 %v1371_v0  ;;  %995 = vmatprep.subr.bf16.mxu1 %v1371_v0 }
  0x86   : > { %996 = vmatpush3.bf16.msra.mxu1 %v1120_v8 }
  0x87   : > { %1001 = vmatprep.subr.bf16.mxu1 %v1371_v0 }
  0x8a   : > { %970 = vmatpush3.bf16.xpose.msra.mxu0 %v1117_v5 }
  0x8b   : > { %971 = vmatprep.subr.bf16.mxu0 %v1371_v0 }
  0x92   : > { %972 = vmatpush3.bf16.xpose.msra.mxu0 %v1118_v6 }
  0x93   : > { %973 = vmatprep.subr.bf16.mxu0 %v1371_v0 }
  0x9a   : > { %974 = vmatpush3.bf16.xpose.msra.mxu0 %v1119_v7 }
  0x9b   : > { %975 = vmatprep.subr.bf16.mxu0 %v1371_v0 }
  0xa2   : > { %976 = vmatpush3.bf16.xpose.msra.mxu0 %v1120_v8 }
  0xa9   : > { %978 = vmatmul.mubr.bf16.vlgmr.msra.gmra.mxu0 %v404_v9 }
 0x169   : > { %v510_v11 = vpop.f32.mrf.mxu0 }
 0x16a   : > { %v511_v12 = vadd.f32 %v910_v10, %v510_v11 }
 0x16b   : > { %v979_v13 = vpop.f32.mrf.mxu0 }
 0x16c   : > { %516 = vmax.xlane.f32.xlu0 %v511_v12 }
 0x16d   : > { %v513_v14 = vpop.f32.mrf.mxu0 }
 0x16f   : > { %v980_v15 = vpop.f32.mrf.mxu0 }
 0x1f5   : > { %v517_v16 = vpop.xlane.xlu0 %516 }
 0x1f6   : > { %v518_v17 = vsub.f32 %v511_v12, %v517_v16 }
 0x1f8   : > { %v519_v18 = vmul.f32 1.442695, %v518_v17 }
 0x1fa   : > { %1129 = vpow2.f32 %v519_v18 }
 0x207   : > { %v1130_v19 = vpop.eup %1129 }
 0x208   : > { %521 = vadd.xlane.f32.xlu0 %v1130_v19  ;;  %v524_v20 = vpack.c.bf16 %v1130_v19, %v1130_v19 }
 0x20a   : > { %998 = vmatmul.mubr.bf16.vlgmr.msra.gmra.mxu1 %v524_v20 }
 0x20b   : > { %1017 = vmatprep.mubr.msk.bf16.mxu1 %vm1372_vm0, %v1371_v0  ;;  %1002 = vmatpush3.bf16.msra.mxu1 %v1121_v21 }
 0x20c   : > { %1003 = vmatprep.subr.bf16.mxu1 %v1371_v0 }
 0x20f   : > { %1004 = vmatpush3.bf16.msra.mxu1 %v1122_v22 }
 0x210   : > { %1005 = vmatprep.subr.bf16.mxu1 %v1371_v0 }
 0x213   : > { %1006 = vmatpush3.bf16.msra.mxu1 %v1123_v23 }
 0x214   : > { %1007 = vmatprep.subr.bf16.mxu1 %v1371_v0 }
 0x217   : > { %1008 = vmatpush3.bf16.msra.mxu1 %v1124_v24 }
 0x218   : > { %1009 = vmatprep.subr.bf16.mxu1 %v1371_v0 }
 0x21b   : > { %1010 = vmatpush3.bf16.msra.mxu1 %v1125_v25 }
 0x21c   : > { %1011 = vmatprep.subr.bf16.mxu1 %v1371_v0 }
 0x21f   : > { %1012 = vmatpush3.bf16.msra.mxu1 %v1126_v26 }
 0x220   : > { %1013 = vmatprep.subr.bf16.mxu1 %v1371_v0 }
 0x223   : > { %1014 = vmatpush3.bf16.msra.mxu1 %v1127_v27 }
 0x224   : > { %1015 = vmatprep.subr.bf16.mxu1 %v1371_v0 }
 0x227   : > { %1016 = vmatpush3.bf16.msra.mxu1 %v1128_v28 }
 0x291   : > { %v522_v29 = vpop.xlane.xlu0 %521 }
 0x292   : > { %1131 = vrcp.f32 %v522_v29 }
 0x29f   : > { %v1132_v30 = vpop.eup %1131 }
 0x2a0   : > { %v675_v31 = vmul.f32 %v1132_v30, %v1130_v19 }
 0x2a2   : > { %676 = vst [vmem:[%s399_s29] sm:$0xff] %v675_v31 }
 0x2ca   : > { %v559_v32 = vpop.f32.mrf.mxu1 }
 0x2cb   : > { %v565_v33 = vmul.f32 %v1132_v30, %v559_v32 }
 0x2cc   : > { %v999_v34 = vpop.f32.mrf.mxu1 }
 0x2cd   : > { %v566_v35 = vpack.c.bf16 %v565_v33, %v565_v33 }
 0x2ce   : > { %v562_v36 = vpop.f32.mrf.mxu1 }
 0x2cf   : > { %1018 = vmatmul.mubr.bf16.vlgmr.msra.gmra.mxu1 %v566_v35 }
 0x2d0   : > { %v1000_v37 = vpop.f32.mrf.mxu1 }
 0x2d1   : > { %1258 = shalt.err (!%p1255_p8)
}
 0x2d2   : > { %s1259_s9 = scalar_lea.hbm %s711_s8, 128  ;;  %s1263_s12 = scalar_lea.hbm %s1712_s6, 256 }
 0x2d3   : > { %p1260_p5 = scmp.ne.s32.totalorder %s711_s8, %s1259_s9  ;;  %p1264_p2 = scmp.lt.s32.totalorder %s711_s8, %s1712_s6 }
 0x2d4   : > { %p1265_p11 = scmp.lt.s32.totalorder %s1263_s12, %s1259_s9 }
 0x2d5   : > { %p1261_p4 = pnand %p1260_p5, %p1501_p12 }
 0x2d6   : > { %p1266_p0 = por %p1265_p11, %p1264_p2 }
 0x2d7   : > { %p1262_p7 = pneg %p1261_p4 }
 0x2d9   : > { %p1267_p1 = pnand %p1266_p0, %p1262_p7 }
 0x2db   : > { %1270 = shalt.err (!%p1267_p1)
}
 0x2dc   : > { %1032 = dma.vmem_to_hbm [thread:$0]  (%p1501_p12), %s714_s28, 128, %s711_s8, %s683_s7   ;;  %v583_v38 = vld [vmem:[%s1584_s15] sm:$0xf] }
 0x2dd   : > { %v584_v39 = vunpack.c.l.bf16 %v583_v38  ;;  %s392_s29 = scalar_lea.vmem [#allocation10], %s908_s20  ;;  %s1664_s1 = scalar_lea.hbm %s1711_s5, %s929_s11 }
 0x2de   : > { %s698_s27 = sshll.u32 %s392_s29, 4  ;;  %s678_s15 = scalar_lea.sflag [#allocation4], %s1566_s30  ;;  %s699_s27 = int_to_ptr.vmem [resolvable:$true] %s698_s27 }
 0x2df   : > { %s1271_s8 = scalar_lea.vmem %s699_s27, 128  ;;  %s1374_s28 = smov [#allocation10]  }
 0x2e0   : > { %p1272_p3 = scmp.ne.s32.totalorder %s699_s27, %s1271_s8  ;;  %s1275_s7 = sshll.u32 %s1374_s28, 4  ;;  %s1276_s7 = int_to_ptr.vmem [resolvable:$false] %s1275_s7 }
 0x2e1   : > { %s1277_s20 = scalar_lea.vmem %s1276_s7, 256  ;;  %p1278_p10 = scmp.lt.s32.totalorder %s699_s27, %s1276_s7 }
 0x2e2   : > { %p1273_p6 = pnand %p1272_p3, %p1501_p12  ;;  %p1279_p8 = scmp.lt.s32.totalorder %s1277_s20, %s1271_s8 }
 0x2e4   : > { %p1274_p9 = pneg %p1273_p6  ;;  %p1280_p5 = por %p1279_p8, %p1278_p10 }
 0x2e6   : > { %p1281_p4 = pnand %p1280_p5, %p1274_p9 }
 0x38f   : > { %v667_v40 = vpop.f32.mrf.mxu1 }
 0x390   : > { %v668_v41 = vadd.f32 %v667_v40, %v584_v39 }
 0x391   : > { %v1019_v42 = vpop.f32.mrf.mxu1 }
 0x392   : > { %1133 = vtanh.f32 %v668_v41 }
 0x393   : > { %v670_v43 = vpop.f32.mrf.mxu1 }
 0x395   : > { %v1020_v44 = vpop.f32.mrf.mxu1 }
 0x39f   : > { %v1134_v45 = vpop.eup %1133 }
 0x3a0   : > { %674 = vst [vmem:[%s392_s29] sm:$0xff] %v1134_v45 }
 0x3a1   : > { %1284 = shalt.err (!%p1281_p4)
}
 0x3a2   : > { %s1285_s24 = scalar_lea.hbm %s1664_s1, 128  ;;  %s1289_s4 = scalar_lea.hbm %s1711_s5, 256 }
 0x3a3   : > { %p1286_p7 = scmp.ne.s32.totalorder %s1664_s1, %s1285_s24  ;;  %p1290_p0 = scmp.lt.s32.totalorder %s1664_s1, %s1711_s5 }
 0x3a4   : > { %p1291_p1 = scmp.lt.s32.totalorder %s1289_s4, %s1285_s24 }
 0x3a5   : > { %p1287_p2 = pnand %p1286_p7, %p1501_p12 }
 0x3a6   : > { %p1292_p3 = por %p1291_p1, %p1290_p0 }
 0x3a7   : > { %p1288_p11 = pneg %p1287_p2 }
 0x3a9   : > { %p1293_p6 = pnand %p1292_p3, %p1288_p11 }
 0x3ab   : > { %1296 = shalt.err (!%p1293_p6)
}
 0x3ac   : > { %1031 = dma.vmem_to_hbm [thread:$0]  (%p1501_p12), %s699_s27, 128, %s1664_s1, %s678_s15  }
 0x3ad PF: > { %s725_s17 = sand.u32 1, %s1343_s21   ;;  %p1744_p9 = scmp.ge.s32.totalorder %s1363_s26, 2 }
 0x3ae   : > { %s726_s10 = scalar_lea.sflag [#allocation4], %s725_s17 }
 0x3af   : > { %p1050_p10 = pnand %p1744_p9, %p1505_p13 }
 0x3b1   : > { %p1051_p8 = pneg %p1050_p10 }
 0x3b3   : > { %1334 = dma.done.wait (%p1051_p8), %s726_s10, 128  }
 0x3b4   : > { %1336 = vsyncadd (%p1051_p8), %s726_s10, 4294967168  ;;  %s735_s12 = scalar_lea.sflag [#allocation12], %s725_s17 }
 0x3b5   : > { %1338 = dma.done.wait (%p1051_p8), %s735_s12, 128  }
 0x3b6   : > { %1340 = vsyncadd (%p1051_p8), %s735_s12, 4294967168  ;;  %s30_s26 = sadd.s32 1, %s1363_s26   ;;  %s1745_s13 = sld [smem:[#allocation18_spill]] }
 0x3b7   : > { %p27_p5 = scmp.ge.s32.totalorder %s30_s26, 4   ;;  %s1746_s23 = sld [smem:[#allocation20_spill]] }
 0x3b8   : > { %s1747_s18 = sld [smem:[#allocation19_spill]]  ;;  %s1748_s21 = smov %s1347_s22 }
 0x3b9   : > { %s1750_s24 = smov %s1359_s25 }
 0x3ba   :  { %29 = sbr.rel (!%p27_p5) target bundleno = 15 (0xf), region = 133 }
 0x3bc   : > { %s1749_s22 = smov %s1745_s13 }
 0x3be   : > { %s1751_s25 = smov %s1747_s18 }
 0x3bf   :  { %740 = vsyncpa [#allocation3], 1 }
 0x3c0   :  { %742 = vsyncpa [#allocation3 + $0x1], 1 }
 0x3c1   :  { %743 = vsyncpa [#allocation6], 1 }
 0x3c2   :  { %745 = vsyncpa [#allocation6 + $0x1], 1 }
 0x3c3   :  { %746 = vsyncpa [#allocation9], 1 }
 0x3c4   :  { %747 = vsyncpa [#allocation4], 1 }
 0x3c5   :  { %749 = vsyncpa [#allocation4 + $0x1], 1 }
 0x3c6   :  { %750 = vsyncpa [#allocation12], 1 }
 0x3c7   :  { %752 = vsyncpa [#allocation12 + $0x1], 1 }

</bundles_post_ra>
